<compile_context>
chip_gen: v6e
topology: v6e:2x2x1
jax: 0.10.0
libtpu: 0.0.40
codegen_flags: <defaults>
</compile_context>

<pallas_src>
import numpy as np
import jax
import jax.numpy as jnp
from jax import lax
from jax.experimental import pallas as pl
from jax.experimental.pallas import tpu as pltpu


def _next_train_kernel(flat_idx_ref,   # SMEM (R_pad,) int32   (scalar prefetch)
                       xs_ref,         # VMEM (1, TILE_R) f32  pixel x per ray
                       ys_ref,         # VMEM (1, TILE_R) f32  pixel y per ray
                       intrin_ref,     # SMEM (4,) f32         [fx, fy, cx, cy]
                       pixels_hbm,     # HBM  (P, C) f32       flattened image rows
                       rgb_ref,        # VMEM (TILE_R, C) f32  OUT gathered pixels
                       dirs_ref,       # VMEM (3, TILE_R) f32  OUT ray directions
                       sem):           # DMA semaphore (1,)
    tile_r = rgb_ref.shape[0]
    base = pl.program_id(0) * tile_r

    # --- (1) issue all per-ray gather DMAs (HBM row -> output tile row). ----
    # They complete in the background while the direction math below runs.
    def _issue(i, carry):
        idx = flat_idx_ref[base + i]
        pltpu.make_async_copy(
            pixels_hbm.at[pl.ds(idx, 1), :],
            rgb_ref.at[pl.ds(i, 1), :],
            sem.at[0],
        ).start()
        return carry

    lax.fori_loop(0, tile_r, _issue, 0)

    # --- (2) ray directions ("RayBundle"), lane-dense (rays on lane axis). --
    fx = intrin_ref[0]
    fy = intrin_ref[1]
    cx = intrin_ref[2]
    cy = intrin_ref[3]

    xs = xs_ref[...]                        # (1, TILE_R)
    ys = ys_ref[...]                        # (1, TILE_R)
    dx = (xs - cx) / fx                     # camera convention: +x right
    dy = -(ys - cy) / fy                    # +y up (image y flipped)
    # dz = -1  =>  dz*dz == 1, so no concatenate / cross-lane reduce needed.
    inv = lax.rsqrt(dx * dx + dy * dy + 1.0)
    dirs_ref[pl.ds(0, 1), :] = dx * inv
    dirs_ref[pl.ds(1, 1), :] = dy * inv
    dirs_ref[pl.ds(2, 1), :] = -inv         # dz * inv with dz = -1

    # --- (3) wait for the per-ray gathers. All copies have identical size, --
    #         so a same-shaped wait descriptor retires one copy each.
    def _wait(i, carry):
        pltpu.make_async_copy(
            pixels_hbm.at[pl.ds(0, 1), :],
            rgb_ref.at[pl.ds(0, 1), :],
            sem.at[0],
        ).wait()
        return carry

    lax.fori_loop(0, tile_r, _wait, 0)


def datamanager_next_train(images, ray_indices, intrinsics, *, tile_r=512):
    """Pallas implementation of the DataManager next_train() hot path.

    Args:
      images:      (N, H, W, C) float32, NHWC (stays in HBM).
      ray_indices: (R, 3) int32, columns are (camera, y, x).
      intrinsics:  (4,) float32, [fx, fy, cx, cy].
      tile_r:      rays per grid step; must be a multiple of 128.

    Returns:
      rgb:  (R, C) float32 gathered ground-truth pixels.
      dirs: (R, 3) float32 normalized camera-space ray directions.
    """
    assert tile_r % 128 == 0, "tile_r must be a multiple of 128 (lane-dense)"
    N, H, W, C = images.shape
    R = ray_indices.shape[0]
    P = N * H * W

    pixels_flat = images.reshape(P, C)

    cam = ray_indices[:, 0]
    yy = ray_indices[:, 1]
    xx = ray_indices[:, 2]
    flat_idx = (cam * (H * W) + yy * W + xx).astype(jnp.int32)
    flat_idx = jnp.clip(flat_idx, 0, P - 1)   # defensive: keep DMA gather in-bounds

    # Pad the ray batch to a multiple of tile_r (padded rays gather row 0 and
    # are sliced away below).
    r_pad = ((R + tile_r - 1) // tile_r) * tile_r
    pad = r_pad - R
    if pad:
        flat_idx = jnp.concatenate([flat_idx, jnp.zeros((pad,), jnp.int32)])
        xx = jnp.concatenate([xx, jnp.zeros((pad,), xx.dtype)])
        yy = jnp.concatenate([yy, jnp.zeros((pad,), yy.dtype)])

    xs = xx.astype(jnp.float32).reshape(1, r_pad)   # lane-dense: rays on lanes
    ys = yy.astype(jnp.float32).reshape(1, r_pad)

    num_tiles = r_pad // tile_r

    out_shapes = (
        jax.ShapeDtypeStruct((r_pad, C), jnp.float32),   # gathered pixels
        jax.ShapeDtypeStruct((3, r_pad), jnp.float32),   # dirs, lane-dense
    )

    grid_spec = pltpu.PrefetchScalarGridSpec(
        num_scalar_prefetch=1,                           # flat_idx -> SMEM
        grid=(num_tiles,),
        in_specs=[
            pl.BlockSpec((1, tile_r), lambda t, idx: (0, t)),                 # xs
            pl.BlockSpec((1, tile_r), lambda t, idx: (0, t)),                 # ys
            pl.BlockSpec(memory_space=pltpu.MemorySpace.SMEM),                # intrinsics
            pl.BlockSpec(memory_space=pl.ANY),                                # pixels (HBM)
        ],
        out_specs=(
            pl.BlockSpec((tile_r, C), lambda t, idx: (t, 0)),                 # rgb
            pl.BlockSpec((3, tile_r), lambda t, idx: (0, t)),                 # dirs
        ),
        scratch_shapes=[pltpu.SemaphoreType.DMA((1,))],
    )

    rgb_pad, dirs_t = pl.pallas_call(
        _next_train_kernel,
        out_shape=out_shapes,
        grid_spec=grid_spec,
        compiler_params=pltpu.CompilerParams(
            dimension_semantics=("parallel",)),          # 2x on v7x megacore
    )(flat_idx, xs, ys, intrinsics, pixels_flat)

    rgb = rgb_pad[:R]
    dirs = dirs_t.T[:R]                                  # back to (R, 3) for callers
    return rgb, dirs


def _reference(images, ray_indices, intrinsics):
    cam = ray_indices[:, 0]
    yy = ray_indices[:, 1]
    xx = ray_indices[:, 2]
    rgb = images[cam, yy, xx]
    fx, fy, cx, cy = [intrinsics[i] for i in range(4)]
    dx = (xx.astype(jnp.float32) - cx) / fx
    dy = -(yy.astype(jnp.float32) - cy) / fy
    dz = -jnp.ones_like(dx)
    d = jnp.stack([dx, dy, dz], axis=-1)
    d = d / jnp.linalg.norm(d, axis=-1, keepdims=True)
    return rgb, d


if __name__ == "__main__":
    key = jax.random.PRNGKey(0)
    k_img, k_cam, k_y, k_x = jax.random.split(key, 4)

    # Small synthetic "dataset": 2 cameras, 16x16 images, 4 channels (RGBA),
    # 1024 sampled rays (2 ray tiles of 512).
    N, H, W, C, R = 2, 16, 16, 4, 1024
    images = jax.random.uniform(k_img, (N, H, W, C), dtype=jnp.float32)

    cam = jax.random.randint(k_cam, (R,), 0, N, dtype=jnp.int32)
    yy = jax.random.randint(k_y, (R,), 0, H, dtype=jnp.int32)
    xx = jax.random.randint(k_x, (R,), 0, W, dtype=jnp.int32)
    ray_indices = jnp.stack([cam, yy, xx], axis=-1)

    # Deterministic pinhole intrinsics [fx, fy, cx, cy].
    intrinsics = jnp.array([W / 2.0, H / 2.0, W / 2.0, H / 2.0], dtype=jnp.float32)

    rgb, dirs = datamanager_next_train(images, ray_indices, intrinsics, tile_r=512)
    jax.block_until_ready((rgb, dirs))

    rgb_ref, dirs_ref = _reference(images, ray_indices, intrinsics)
    assert np.allclose(np.asarray(rgb), np.asarray(rgb_ref), atol=1e-5)
    assert np.allclose(np.asarray(dirs), np.asarray(dirs_ref), atol=1e-4)

    print("KERNEL_OK")
</pallas_src>

<mosaic_0001>
module attributes {stable_mosaic.version = 11 : i64} {
  func.func @_next_train_kernel(%arg0: i32, %arg1: memref<1024xi32, #tpu.memory_space<smem>>, %arg2: memref<1x512xf32, #tpu.memory_space<vmem>>, %arg3: memref<1x512xf32, #tpu.memory_space<vmem>>, %arg4: memref<4xf32, #tpu.memory_space<smem>>, %arg5: memref<512x4xf32, #tpu.memory_space<any>>, %arg6: memref<512x4xf32, #tpu.memory_space<vmem>>, %arg7: memref<3x512xf32, #tpu.memory_space<vmem>>, %arg8: memref<1x!tpu.dma_semaphore, #tpu.memory_space<semaphore_mem>>) attributes {dimension_semantics = [#tpu.dimension_semantics<parallel>], iteration_bounds = array<i64: 2>, scalar_prefetch = 1 : i64, scratch_operands = 1 : i64, tpu.core_type = #tpu.core_type<tc>, window_params = [{transform_indices = @transform_0, window_bounds = array<i64: 1, 512>}, {transform_indices = @transform_1, window_bounds = array<i64: 1, 512>}, {transform_indices = @transform_2, window_bounds = array<i64: 4>}, {}, {transform_indices = @transform_4, window_bounds = array<i64: 512, 4>}, {transform_indices = @transform_5, window_bounds = array<i64: 3, 512>}]} {
    %c512_i32 = arith.constant 512 : i32
    %0 = arith.muli %arg0, %c512_i32 : i32
    %c0_i32 = arith.constant 0 : i32
    %c512_i32_0 = arith.constant 512 : i32
    %1 = arith.addi %c0_i32, %c512_i32_0 : i32
    %c1_i32 = arith.constant 1 : i32
    scf.for %arg9 = %c0_i32 to %1 step %c1_i32  : i32 {
      %32 = arith.addi %0, %arg9 : i32
      %33 = arith.index_cast %32 : i32 to index
      %34 = memref.load %arg1[%33] : memref<1024xi32, #tpu.memory_space<smem>>
      %c0_i32_17 = arith.constant 0 : i32
      %c0_i32_18 = arith.constant 0 : i32
      %35 = tpu.memref_slice %arg5[%34, %c0_i32_18] : memref<512x4xf32, #tpu.memory_space<any>> -> memref<1x4xf32, #tpu.memory_space<any>>
      %c0_i32_19 = arith.constant 0 : i32
      %36 = tpu.memref_slice %arg6[%arg9, %c0_i32_19] : memref<512x4xf32, #tpu.memory_space<vmem>> -> memref<1x4xf32, #tpu.memory_space<vmem>>
      %37 = tpu.memref_slice %arg8[%c0_i32_17] : memref<1x!tpu.dma_semaphore, #tpu.memory_space<semaphore_mem>> -> memref<1x!tpu.dma_semaphore, #tpu.memory_space<semaphore_mem>>
      %38 = tpu.memref_squeeze %37 : memref<1x!tpu.dma_semaphore, #tpu.memory_space<semaphore_mem>> -> memref<!tpu.dma_semaphore, #tpu.memory_space<semaphore_mem>>
      tpu.enqueue_dma source(%35 : memref<1x4xf32, #tpu.memory_space<any>>) target(%36 : memref<1x4xf32, #tpu.memory_space<vmem>>) target_semaphore(%38 : memref<!tpu.dma_semaphore, #tpu.memory_space<semaphore_mem>>)
    }
    %c512_i32_1 = arith.constant 512 : i32
    %c0 = arith.constant 0 : index
    %2 = memref.load %arg4[%c0] : memref<4xf32, #tpu.memory_space<smem>>
    %c1 = arith.constant 1 : index
    %3 = memref.load %arg4[%c1] : memref<4xf32, #tpu.memory_space<smem>>
    %c2 = arith.constant 2 : index
    %4 = memref.load %arg4[%c2] : memref<4xf32, #tpu.memory_space<smem>>
    %c3 = arith.constant 3 : index
    %5 = memref.load %arg4[%c3] : memref<4xf32, #tpu.memory_space<smem>>
    %c0_2 = arith.constant 0 : index
    %c0_3 = arith.constant 0 : index
    %6 = vector.load %arg2[%c0_2, %c0_3] : memref<1x512xf32, #tpu.memory_space<vmem>>, vector<1x512xf32>
    %c0_4 = arith.constant 0 : index
    %c0_5 = arith.constant 0 : index
    %7 = vector.load %arg3[%c0_4, %c0_5] : memref<1x512xf32, #tpu.memory_space<vmem>>, vector<1x512xf32>
    %8 = vector.broadcast %4 : f32 to vector<1x512xf32>
    %9 = arith.subf %6, %8 : vector<1x512xf32>
    %10 = vector.broadcast %2 : f32 to vector<1x512xf32>
    %11 = arith.divf %9, %10 : vector<1x512xf32>
    %12 = vector.broadcast %5 : f32 to vector<1x512xf32>
    %13 = arith.subf %7, %12 : vector<1x512xf32>
    %cst = arith.constant 0.000000e+00 : f32
    %14 = vector.broadcast %cst : f32 to vector<1x512xf32>
    %15 = arith.subf %14, %13 : vector<1x512xf32>
    %16 = vector.broadcast %3 : f32 to vector<1x512xf32>
    %17 = arith.divf %15, %16 : vector<1x512xf32>
    %18 = arith.mulf %11, %11 : vector<1x512xf32>
    %19 = arith.mulf %17, %17 : vector<1x512xf32>
    %20 = arith.addf %18, %19 : vector<1x512xf32>
    %cst_6 = arith.constant 1.000000e+00 : f32
    %21 = vector.broadcast %cst_6 : f32 to vector<1x512xf32>
    %22 = arith.addf %20, %21 : vector<1x512xf32>
    %23 = math.rsqrt %22 : vector<1x512xf32>
    %24 = arith.mulf %11, %23 : vector<1x512xf32>
    %c0_7 = arith.constant 0 : index
    %c0_8 = arith.constant 0 : index
    %25 = vector.load %arg7[%c0_7, %c0_8] : memref<3x512xf32, #tpu.memory_space<vmem>>, vector<1x512xf32>
    tpu.vector_store %arg7[%c0_7, %c0_8], %24 {strides = array<i32>} : memref<3x512xf32, #tpu.memory_space<vmem>>, vector<1x512xf32>,
    %26 = arith.mulf %17, %23 : vector<1x512xf32>
    %c1_9 = arith.constant 1 : index
    %c0_10 = arith.constant 0 : index
    %27 = vector.load %arg7[%c1_9, %c0_10] : memref<3x512xf32, #tpu.memory_space<vmem>>, vector<1x512xf32>
    tpu.vector_store %arg7[%c1_9, %c0_10], %26 {strides = array<i32>} : memref<3x512xf32, #tpu.memory_space<vmem>>, vector<1x512xf32>,
    %cst_11 = arith.constant 0.000000e+00 : f32
    %28 = vector.broadcast %cst_11 : f32 to vector<1x512xf32>
    %29 = arith.subf %28, %23 : vector<1x512xf32>
    %c2_12 = arith.constant 2 : index
    %c0_13 = arith.constant 0 : index
    %30 = vector.load %arg7[%c2_12, %c0_13] : memref<3x512xf32, #tpu.memory_space<vmem>>, vector<1x512xf32>
    tpu.vector_store %arg7[%c2_12, %c0_13], %29 {strides = array<i32>} : memref<3x512xf32, #tpu.memory_space<vmem>>, vector<1x512xf32>,
    %c0_i32_14 = arith.constant 0 : i32
    %c512_i32_15 = arith.constant 512 : i32
    %31 = arith.addi %c0_i32_14, %c512_i32_15 : i32
    %c1_i32_16 = arith.constant 1 : i32
    scf.for %arg9 = %c0_i32_14 to %31 step %c1_i32_16  : i32 {
      %c0_i32_17 = arith.constant 0 : i32
      %c0_i32_18 = arith.constant 0 : i32
      %c0_i32_19 = arith.constant 0 : i32
      %32 = tpu.memref_slice %arg5[%c0_i32_18, %c0_i32_19] : memref<512x4xf32, #tpu.memory_space<any>> -> memref<1x4xf32, #tpu.memory_space<any>>
      %c0_i32_20 = arith.constant 0 : i32
      %c0_i32_21 = arith.constant 0 : i32
      %33 = tpu.memref_slice %arg6[%c0_i32_20, %c0_i32_21] : memref<512x4xf32, #tpu.memory_space<vmem>> -> memref<1x4xf32, #tpu.memory_space<vmem>>
      %34 = tpu.memref_slice %arg8[%c0_i32_17] : memref<1x!tpu.dma_semaphore, #tpu.memory_space<semaphore_mem>> -> memref<1x!tpu.dma_semaphore, #tpu.memory_space<semaphore_mem>>
      %35 = tpu.memref_squeeze %34 : memref<1x!tpu.dma_semaphore, #tpu.memory_space<semaphore_mem>> -> memref<!tpu.dma_semaphore, #tpu.memory_space<semaphore_mem>>
      tpu.wait_dma2 semaphore(%35 : memref<!tpu.dma_semaphore, #tpu.memory_space<semaphore_mem>>) src(%32 : memref<1x4xf32, #tpu.memory_space<any>>) dst(%33 : memref<1x4xf32, #tpu.memory_space<vmem>>)
    }
    return
  }
  func.func @transform_0(%arg0: i32, %arg1: memref<1024xi32, #tpu.memory_space<smem>>) -> (i32, i32) {
    %c0_i32 = arith.constant 0 : i32
    %c0_i32_0 = arith.constant 0 : i32
    return %c0_i32, %arg0 : i32, i32
  }
  func.func @transform_1(%arg0: i32, %arg1: memref<1024xi32, #tpu.memory_space<smem>>) -> (i32, i32) {
    %c0_i32 = arith.constant 0 : i32
    %c0_i32_0 = arith.constant 0 : i32
    return %c0_i32, %arg0 : i32, i32
  }
  func.func @transform_2(%arg0: i32, %arg1: memref<1024xi32, #tpu.memory_space<smem>>) -> i32 {
    %c0_i32 = arith.constant 0 : i32
    %c0_i32_0 = arith.constant 0 : i32
    return %c0_i32 : i32
  }
  func.func @transform_4(%arg0: i32, %arg1: memref<1024xi32, #tpu.memory_space<smem>>) -> (i32, i32) {
    %c0_i32 = arith.constant 0 : i32
    %c0_i32_0 = arith.constant 0 : i32
    return %arg0, %c0_i32 : i32, i32
  }
  func.func @transform_5(%arg0: i32, %arg1: memref<1024xi32, #tpu.memory_space<smem>>) -> (i32, i32) {
    %c0_i32 = arith.constant 0 : i32
    %c0_i32_0 = arith.constant 0 : i32
    return %c0_i32, %arg0 : i32, i32
  }
}

</mosaic_0001>

<bundles_post_ra>
// kernel: tpu_custom_call.1
= control target key start
LH: loop header
LB: loop body
LE: loop exit
PB: predicated region body
PF: predicated region fallthrough
CT: control target
= control target key end

     0   :  { %s890_s0 = inlined_call_operand.vmem [shape: s32[1024], index: 0, kind: input, shape index: {}]   ;;  %s891_s1 = inlined_call_operand.vmem [shape: f32[1,1024], index: 1, kind: input, shape index: {}]   ;;  %s892_s2 = inlined_call_operand.vmem [shape: f32[1,1024], index: 2, kind: input, shape index: {}]   ;;  %s893_s3 = inlined_call_operand.vmem [shape: f32[4], index: 3, kind: input, shape index: {}]   ;;  %s894_s4 = inlined_call_operand.vmem [shape: f32[512,4], index: 4, kind: input, shape index: {}]   ;;  %s895_s5 = inlined_call_operand.vmem [shape: f32[1024,4], index: 5, kind: output, shape index: {0}]   ;;  %s896_s6 = inlined_call_operand.hbm [shape: f32[3,1024], index: 6, kind: output, shape index: {1}]  }
   0x1   :  { %898 = sst [smem:[#allocation15_spill]] %s893_s3  ;;  %s12_s23 = sshll.u32 %s890_s0, 4  ;;  %s13_s23 = int_to_ptr.vmem [resolvable:$true] %s12_s23 }
   0x2   :  { %s602_s24 = scalar_lea.vmem %s13_s23, 128  ;;  %p607_p1 = scmp.lt.s32.totalorder %s13_s23, %s13_s23 }
   0x3   :  { %p603_p0 = scmp.ne.s32.totalorder %s13_s23, %s602_s24  ;;  %p608_p2 = scmp.lt.s32.totalorder %s602_s24, %s602_s24 }
   0x5   :  { %p609_p3 = por %p608_p2, %p607_p1 }
   0x7   :  { %p610_p4 = pnand %p609_p3, %p603_p0 }
   0x9   :  { %613 = shalt.err (!%p610_p4)  }
   0xa   :  { %s715_s25 = smov [#allocation4]  }
   0xb   :  { %15 = dma.vmem_to_smem %s13_s23, 128, %s715_s25, [#allocation3] }
   0xc   :  { %679 = dma.done.wait [#allocation3], 128 }
   0xd   :  { %680 = vsyncadd [#allocation3], 4294967168 }
   0xe   :  { %17 = sfence }
   0xf   :  { %18 = vsyncpa [#allocation7], 0 }
  0x10   :  { %19 = vsyncpa [#allocation6], 0 }
  0x11   :  { %21 = vsyncpa [#allocation6 + $0x1], 0  ;;  %s756_s26 = smov 0   ;;  %s758_s27 = smov 0  }
  0x12   :  { %s760_s0 = smov 0   ;;  %s762_s28 = smov 0  }
  0x13 LB: > { %s777_s29 = sadd.s32 4294967295, %s705_s28   ;;  %s505_s30 = sadd.s32 4294967294, %s705_s28   ;;  %s705_s28 = sphi %s762_s28, %s910_s28   ;;  %s701_s0 = sphi %s760_s0, %s909_s0   ;;  %s697_s27 = sphi %s758_s27, %s908_s27   ;;  %s693_s26 = sphi %s756_s26, %s907_s26  }
  0x14   : > { %s781_s7 = sadd.s32 1, %s705_s28   ;;  %s133_s8 = sadd.s32 1, %s701_s0 }
  0x15   : > { %s130_s9 = ssub.s32 %s705_s28, %s781_s7  ;;  %p143_p5 = scmp.ne.s32.totalorder %s701_s0, %s697_s27 }
  0x16   : > { %p131_p6 = scmp.eq.s32.totalorder %s130_s9, 0  ;;  %p144_p7 = scmp.eq.s32.totalorder %s777_s29, 1 }
  0x17   : > { %p149_p8 = scmp.ne.s32.totalorder %s697_s27, %s693_s26  ;;  %p150_p9 = scmp.eq.s32.totalorder %s505_s30, 1 }
  0x18   : > { %s792_s10 = scalar_select %p131_p6, %s701_s0, %s133_s8  }
  0x19   : > { %p794_p10 = por %p144_p7, %p143_p5  ;;  %p798_p11 = por %p150_p9, %p149_p8 }
  0x1a   : > { %899 = sst [smem:[#allocation14_spill]] %s792_s10  ;;  %p506_p12 = scmp.ge.s32.totalorder %s705_s28, 1 }
  0x1b   : > { %p157_p13 = scmp.lt.s32.totalorder %s705_s28, 3  ;;  %p543_p0 = scmp.eq.s32.totalorder %s777_s29, 0 }
  0x1c   : > { %s903_s3 = sld [smem:[#allocation15_spill]] }
  0x1d   : > { %p805_p1 = pnand %p506_p12, %p157_p13 }
  0x1f   : > { %p535_p2 = pneg %p805_p1 }
  0x21   : > { %p536_p3 = pnand %p543_p0, %p535_p2 }
  0x22   : > { %s170_s16 = sshll.u32 %s903_s3, 4  ;;  %s171_s16 = int_to_ptr.vmem [resolvable:$true] %s170_s16 }
  0x23   : > { %s614_s17 = scalar_lea.vmem %s171_s16, 16  ;;  %p616_p5 = pneg %p536_p3 }
  0x24   : > { %p615_p4 = scmp.ne.s32.totalorder %s171_s16, %s614_s17  ;;  %p622_p8 = scmp.lt.s32.totalorder %s171_s16, %s171_s16 }
  0x25   : > { %p623_p9 = scmp.lt.s32.totalorder %s614_s17, %s614_s17 }
  0x26   : > { %p617_p6 = pnand %p616_p5, %p615_p4 }
  0x27   : > { %p624_p12 = por %p623_p9, %p622_p8 }
  0x28   : > { %p618_p7 = pneg %p617_p6 }
  0x2a   : > { %p625_p13 = pnand %p624_p12, %p618_p7 }
  0x2c   : > { %628 = shalt.err (!%p625_p13)
}
  0x2d   : > { %s716_s18 = smov [#allocation5]   ;;  %199 = sbr.rel (%p805_p1) target bundleno = 149 (0x95), region = 32 }
  0x2e   : > { %538 = dma.vmem_to_smem (!%p536_p3), %s171_s16, 16, %s716_s18, [#allocation7]  }
  0x32   : > { %682 = dma.done.wait (%p543_p0), [#allocation7], 16  }
  0x33   : > { %684 = vsyncadd (%p543_p0), [#allocation7], 4294967280 }
  0x34   : > { %205 = sfence }
  0x35   : > { %s897_s19 = sand.u32 1, %s697_s27   ;;  %s512_s20 = sshll.u32 %s777_s29, 2 }
  0x36   : > { %s511_s21 = sshll.u32 %s897_s19, 4  ;;  %p235_p2 = scmp.lt.s32.totalorder %s512_s20, 7 }
  0x37   : > { %s514_s22 = sshll.u32 %s777_s29, 6  ;;  %s516_s23 = sshll.u32 %s777_s29, 9 }
  0x38   : > { %s912_s20 = smov (!%p235_p2, %s512_s20), 7  ;;  %p245_p1 = scmp.lt.s32.totalorder %s514_s22, 127 }
  0x39   : > { %s242_s13 = scalar_lea.vmem %s892_s2, %s912_s20  ;;  %s841_s18 = scalar_lea.vmem [#allocation8], %s511_s21 }
  0x3a   : > { %s914_s22 = smov (!%p245_p1, %s514_s22), 127  ;;  %s707_s19 = smov 0  }
  0x3b   : > { %s515_s14 = sshll.u32 %s914_s22, 3 }
  0x3c   : > { %s248_s17 = scalar_lea.vmem %s895_s5, %s515_s14 }
  0x3d LB: >> { %s258_s3 = sadd.s32 %s709_s19, %s516_s23  ;;  %s261_s24 = scalar_lea.vmem %s248_s17, %s709_s19  ;;  %s709_s19 = sphi %s707_s19, %s257_s19  }
  0x3e   : >> { %s259_s10 = sld [smem:[#allocation4 + %s258_s3]] }
  0x44   : >> { %s260_s8 = scalar_lea.vmem %s894_s4, %s259_s10 }
  0x45   : >> { %v280_v0 = vld [vmem:[%s260_s8] sm:$0x1] }
  0x46   : >> { %281 = vst [vmem:[%s261_s24] sm:$0x1] %v280_v0 }
  0x47   : >> { %307 = vsyncadd [#allocation2], 16  ;;  %s257_s19 = sadd.s32 1, %s709_s19  }
  0x48   : >> { %p254_p0 = scmp.ge.s32.totalorder %s257_s19, 512  }
  0x49   : > { %s308_s21 = sld [smem:[#allocation5]] (%p254_p0)  ;;  %v313_v3 = vld [vmem:[%s242_s13] sm:$0xf] (%p254_p0)  ;;  %s904_s30 = scalar_lea.vmem (%p254_p0), %s891_s1, %s912_s20  ;;  %v331_v18 = vlaneseq (%p254_p0) }
  0x4a   : > { %256 = sbr.rel (!%p254_p0) target bundleno = 61 (0x3d), region = 145  ;;  %s517_s22 = sld [smem:[#allocation5 + $0x1]] (%p254_p0)  ;;  %v312_v5 = vld [vmem:[%s904_s30] sm:$0xf] (%p254_p0) }
  0x4b   : > { %s519_s9 = sld [smem:[#allocation5 + $0x3]] (%p254_p0)  ;;  %vm333_vm0 = vcmp.lt.s32.totalorder (%p254_p0), %v331_v18, 512  ;;  %s711_s19 = smov (%p254_p0), 0  }
  0x4c   : > { %s518_s14 = sld [smem:[#allocation5 + $0x2]] (%p254_p0) }
  0x4f   : > { %v316_v1 = vstv %s308_s21 }
  0x50   : > { %596 = vrcp.f32 %v316_v1  ;;  %v322_v2 = vstv %s517_s22 }
  0x51   : > { %598 = vrcp.f32 %v322_v2  ;;  %v319_v4 = vstv %s519_s9 }
  0x52   : > { %v314_v6 = vstv %s518_s14  ;;  %v320_v7 = vsub.f32 %v313_v3, %v319_v4 }
  0x53   : > { %v315_v8 = vsub.f32 %v312_v5, %v314_v6 }
  0x54   : > { %v321_v9 = vsub.f32 0.0, %v320_v7 }
  0x5d   : > { %v597_v10 = vpop.eup %596 }
  0x5e   : > { %v599_v11 = vpop.eup %598  ;;  %v318_v12 = vmul.f32 %v597_v10, %v315_v8 }
  0x5f   : > { %v324_v13 = vmul.f32 %v599_v11, %v321_v9 }
  0x60   : > { %v325_v14 = vmul.f32 %v318_v12, %v318_v12 }
  0x61   : > { %v326_v15 = vmul.f32 %v324_v13, %v324_v13 }
  0x63   : > { %v327_v16 = vadd.f32 %v326_v15, %v325_v14 }
  0x65   : > { %v328_v17 = vadd.f32 1.0, %v327_v16 }
  0x67   : > { %600 = vrsqrt.f32 %v328_v17 }
  0x74   : > { %v601_v19 = vpop.eup %600 }
  0x75   : > { %v330_v20 = vmul.f32 %v601_v19, %v318_v12  ;;  %v336_v21 = vmul.f32 %v601_v19, %v324_v13  ;;  %v339_v22 = vsub.f32 0.0, %v601_v19 }
  0x77   : > { %335 = vst.msk [vmem:[%s841_s18] ss:$4 sm:$0xf] %vm333_vm0, %v330_v20  ;;  %520 = vst.msk [vmem:[%s841_s18 + $0x1] ss:$4 sm:$0xf] %vm333_vm0, %v336_v21 }
  0x78   : > { %521 = vst.msk [vmem:[%s841_s18 + $0x2] ss:$4 sm:$0xf] %vm333_vm0, %v339_v22 }
  0x79 LB: >> { %685 = dma.done.wait [#allocation2], 16  ;;  %s713_s19 = sphi %s711_s19, %s347_s19  }
  0x7a   : >> { %686 = vsyncadd [#allocation2], 4294967280  ;;  %s347_s19 = sadd.s32 1, %s713_s19  }
  0x7b   : >> { %p344_p3 = scmp.ge.s32.totalorder %s347_s19, 512  }
  0x7c   : > { %s528_s20 = sshll.u32 (%p344_p3), %s777_s29, 8  ;;  %s375_s16 = sshll.u32 (%p344_p3), %s841_s18, 4  ;;  %s376_s16 = int_to_ptr.vmem [resolvable:$true] %s375_s16 }
  0x7d   : > { %346 = sbr.rel (!%p344_p3) target bundleno = 121 (0x79), region = 156  ;;  %s373_s15 = scalar_lea.hbm (%p344_p3), %s896_s6, %s528_s20 }
  0x7e   : > { %s905_s17 = sand.u32 (%p344_p3), 1, %s697_s27   ;;  %s629_s25 = scalar_lea.vmem (%p344_p3), %s376_s16, 256 }
  0x7f   : > { %s357_s24 = scalar_lea.sflag (%p344_p3), [#allocation6], %s905_s17  ;;  %p630_p4 = scmp.ne.s32.totalorder (%p344_p3), %s376_s16, %s629_s25 }
  0x80   : > { %s717_s8 = smov (%p344_p3), [#allocation8]  }
  0x81   : > { %p631_p5 = pnand (%p344_p3), %p630_p4, %p794_p10  ;;  %s633_s21 = sshll.u32 (%p344_p3), %s717_s8, 4  ;;  %s634_s21 = int_to_ptr.vmem [resolvable:$false] %s633_s21 }
  0x82   : > { %s635_s22 = scalar_lea.vmem %s634_s21, 512  ;;  %p636_p7 = scmp.lt.s32.totalorder %s376_s16, %s634_s21 }
  0x83   : > { %p632_p6 = pneg %p631_p5  ;;  %p637_p8 = scmp.lt.s32.totalorder %s635_s22, %s629_s25 }
  0x85   : > { %p638_p9 = por %p637_p8, %p636_p7 }
  0x87   : > { %p639_p12 = pnand %p638_p9, %p632_p6 }
  0x89   : > { %642 = shalt.err (!%p639_p12)
}
  0x8a   : > { %s643_s29 = scalar_lea.hbm %s373_s15, 256  ;;  %s647_s14 = scalar_lea.hbm %s896_s6, 512 }
  0x8b   : > { %p644_p13 = scmp.ne.s32.totalorder %s373_s15, %s643_s29  ;;  %p648_p0 = scmp.lt.s32.totalorder %s373_s15, %s896_s6 }
  0x8c   : > { %p649_p3 = scmp.lt.s32.totalorder %s647_s14, %s643_s29 }
  0x8d   : > { %p645_p2 = pnand %p644_p13, %p794_p10 }
  0x8e   : > { %p650_p4 = por %p649_p3, %p648_p0 }
  0x8f   : > { %p646_p1 = pneg %p645_p2 }
  0x91   : > { %p651_p5 = pnand %p650_p4, %p646_p1 }
  0x93   : > { %654 = shalt.err (!%p651_p5)
}
  0x94   : > { %533 = dma.vmem_to_hbm [thread:$0]  (%p794_p10), %s376_s16, 256, %s373_s15, %s357_s24  }
  0x95 PF: > { %p545_p6 = scmp.ge.s32.totalorder %s705_s28, 2  ;;  %s395_s30 = sand.u32 1, %s693_s26  }
  0x96   : > { %s396_s19 = scalar_lea.sflag [#allocation6], %s395_s30 }
  0x97   : > { %p540_p7 = pnand %p545_p6, %p798_p11 }
  0x99   : > { %p541_p8 = pneg %p540_p7 }
  0x9b   : > { %688 = dma.done.wait (%p541_p8), %s396_s19, 256  }
  0x9c   : > { %690 = vsyncadd (%p541_p8), %s396_s19, 4294967040  ;;  %s906_s20 = sld [smem:[#allocation14_spill]]  ;;  %p24_p9 = scmp.ge.s32.totalorder %s781_s7, 4  }
  0x9d   : > { %s907_s26 = smov %s697_s27  ;;  %s908_s27 = smov %s701_s0 }
  0x9e   : > { %s910_s28 = smov %s781_s7  ;;  %26 = sbr.rel (!%p24_p9) target bundleno = 19 (0x13), region = 167 }
  0xa2   : > { %s909_s0 = smov %s906_s20 }
  0xa3   :  { %401 = vsyncpa [#allocation6], 1 }
  0xa4   :  { %403 = vsyncpa [#allocation6 + $0x1], 1 }
  0xa5   :  { %404 = vsyncpa [#allocation7], 1 }
  0xa6   :  { %406 = vsyncpa [#allocation7 + $0x1], 1 }
  0xa7   :  { %407 = vsyncmov [#allocation2] }
  0xaa   :  { %s408_s28 = vpop.sfrf %407 }
  0xab   :  { %p527_p10 = scmp.ne.s32.totalorder %s408_s28, 0 }
  0xad   :  { %412 = shalt.err (%p527_p10)  }

</bundles_post_ra>
